<compile_context>
chip_gen: v6e
topology: v6e:2x2x1
jax: 0.10.0
libtpu: 0.0.40
codegen_flags: <defaults>
</compile_context>

<pallas_src>
import functools

import jax
import jax.numpy as jnp
from jax.experimental import pallas as pl
from jax.experimental.pallas import tpu as pltpu


# ---------------------------------------------------------------------------
# Pallas kernel: full LSTM recurrence + last-step Linear
# ---------------------------------------------------------------------------
def lstm_fc_kernel(x_ref, w_ref, v_ref, out_ref, *, hidden_size, output_size):
    # x_ref:   (T, Dp)        bf16 input sequence, zero-padded to Dp columns
    # w_ref:   (Dp+2*Hp, 4H)  bf16 packed weights:
    #            rows [0, Dp)        = W_ih^T (g-gate cols pre-scaled by 2), zero-padded
    #            rows [Dp, Dp+Hp)    = W_hh^T (g-gate cols pre-scaled by 2), zero-padded
    #            rows [Dp+Hp, ...)   = W_fc^T zero-padded to 4H columns
    # v_ref:   (4, 4H)        f32 packed vectors:
    #            row 0 = b_ih + b_hh (g slice pre-scaled by 2)
    #            row 1 = h0 (lanes 0..H-1), row 2 = c0, row 3 = b_fc (lanes 0..O-1)
    # out_ref: (3, 4H)        f32: row 0 = fc(h_T) (lanes 0..O-1),
    #                               row 1 = h_T,  row 2 = c_T (lanes 0..H-1)
    H, O = hidden_size, output_size
    T, Dp = x_ref.shape
    G4 = w_ref.shape[1]
    Hp = (w_ref.shape[0] - Dp) // 2

    # ---- Hoisted loads / slices (done once, outside the recurrence) ---------
    w = w_ref[...]                                   # single bf16 load
    wih = w[0:Dp, :]                                 # (Dp, 4H)
    whh = w[Dp:Dp + H, :]                            # (H,  4H)
    wfc = w[Dp + Hp:Dp + Hp + H, 0:O]                # (H,  O)

    v = v_ref[...]
    b = v[0:1, :]                                    # (1, 4H) f32
    h = v[1:2, 0:H]                                  # (1, H)  f32
    c = v[2:3, 0:H]                                  # (1, H)  f32
    bfc = v[3:4, 0:O]                                # (1, O)  f32

    # ---- Hoisted input projection (off the serial chain), bf16 MXU pass -----
    x_proj = jnp.dot(x_ref[...], wih,
                     preferred_element_type=jnp.float32) + b       # (T, 4H) f32

    # ---- Fully unrolled recurrence (T is a static trace-time constant) ------
    for t in range(T):
        gates = x_proj[t:t + 1, :] + jnp.dot(
            h.astype(jnp.bfloat16), whh,
            preferred_element_type=jnp.float32)                    # (1, 4H) f32
        # One full-vreg sigmoid covers all four gates (single EUP push);
        # the g gate was pre-scaled by 2, so tanh(g) = 2*sigmoid(2g) - 1.
        sig = jax.nn.sigmoid(gates)
        i_g = sig[:, 0 * H:1 * H]
        f_g = sig[:, 1 * H:2 * H]
        g_g = 2.0 * sig[:, 2 * H:3 * H] - 1.0
        o_g = sig[:, 3 * H:4 * H]
        c = f_g * c + i_g * g_g
        h = o_g * jnp.tanh(c)

    # ---- Epilogue: fc on the last hidden state, single lane-dense store -----
    fc_out = jnp.dot(h.astype(jnp.bfloat16), wfc,
                     preferred_element_type=jnp.float32) + bfc      # (1, O)

    pad_o = jnp.zeros((1, G4 - O), jnp.float32)
    pad_h = jnp.zeros((1, G4 - H), jnp.float32)
    out_ref[...] = jnp.concatenate([
        jnp.concatenate([fc_out, pad_o], axis=1),
        jnp.concatenate([h, pad_h], axis=1),
        jnp.concatenate([c, pad_h], axis=1),
    ], axis=0)


def lstm_model_forward(x, params, hidden=None):
    """Mirrors LSTMModel.forward: returns (out, (h_n, c_n)).

    x:      (B=1, T, D) float32  (a 2-D (T, D) input is unsqueezed like PyTorch)
    hidden: optional ((1, 1, H), (1, 1, H))
    """
    if x.ndim == 2:
        x = x[None, ...]
    B, T, D = x.shape
    assert B == 1, "default-hidden path of the reference module implies batch=1"

    H = params["w_hh"].shape[1]
    O = params["w_fc"].shape[0]
    G4 = 4 * H

    if hidden is None:
        h0 = jnp.zeros((1, 1, H), jnp.float32)
        c0 = jnp.zeros((1, 1, H), jnp.float32)
    else:
        h0, c0 = hidden

    # ---- Weight prep (glue, not the hot path) --------------------------------
    # g-gate pre-scaling so the kernel can use tanh(x) = 2*sigmoid(2x) - 1.
    gate_scale = jnp.ones((G4,), jnp.float32).at[2 * H:3 * H].set(2.0)

    wih_t = params["w_ih"].T * gate_scale[None, :]            # (D, 4H)
    whh_t = params["w_hh"].T * gate_scale[None, :]            # (H, 4H)
    b = (params["b_ih"] + params["b_hh"]) * gate_scale        # (4H,)
    wfc_t = params["w_fc"].T                                  # (H, O)
    bfc = params["b_fc"]                                      # (O,)

    # 16-sublane alignment for the bf16 weight slab segments.
    Dp = ((D + 15) // 16) * 16
    Hp = ((H + 15) // 16) * 16

    def pad_rows(a, rows):
        return jnp.pad(a, ((0, rows - a.shape[0]), (0, 0)))

    w_packed = jnp.concatenate([
        pad_rows(wih_t, Dp),
        pad_rows(whh_t, Hp),
        pad_rows(jnp.pad(wfc_t, ((0, 0), (0, G4 - O))), Hp),
    ], axis=0).astype(jnp.bfloat16)                           # (Dp+2Hp, 4H) bf16

    def pad_lane(vec, width):
        vec = vec.reshape(1, -1).astype(jnp.float32)
        return jnp.pad(vec, ((0, 0), (0, width - vec.shape[1])))

    v_packed = jnp.concatenate([
        b.reshape(1, G4).astype(jnp.float32),
        pad_lane(h0.reshape(-1), G4),
        pad_lane(c0.reshape(-1), G4),
        pad_lane(bfc, G4),
    ], axis=0)                                                # (4, 4H) f32

    x_pad = jnp.pad(x[0], ((0, 0), (0, Dp - D))).astype(jnp.bfloat16)  # (T, Dp)

    vmem = pl.BlockSpec(memory_space=pltpu.MemorySpace.VMEM)
    kernel = functools.partial(lstm_fc_kernel, hidden_size=H, output_size=O)

    packed = pl.pallas_call(
        kernel,
        out_shape=jax.ShapeDtypeStruct((3, G4), jnp.float32),
        in_specs=[vmem, vmem, vmem],
        out_specs=vmem,
    )(x_pad, w_packed, v_packed)

    out = packed[0:1, 0:O]
    hT = packed[1:2, 0:H]
    cT = packed[2:3, 0:H]
    return out, (hT[None, ...], cT[None, ...])


# ---------------------------------------------------------------------------
# Pure-JAX reference (for correctness check)
# ---------------------------------------------------------------------------
def lstm_model_reference(x, params, hidden=None):
    if x.ndim == 2:
        x = x[None, ...]
    B, T, D = x.shape
    H = params["w_hh"].shape[1]
    if hidden is None:
        h = jnp.zeros((1, H), jnp.float32)
        c = jnp.zeros((1, H), jnp.float32)
    else:
        h, c = hidden[0][0], hidden[1][0]
    wih_t, whh_t = params["w_ih"].T, params["w_hh"].T
    b = params["b_ih"] + params["b_hh"]
    for t in range(T):
        gates = x[0, t:t + 1, :] @ wih_t + h @ whh_t + b
        i = jax.nn.sigmoid(gates[:, 0 * H:1 * H])
        f = jax.nn.sigmoid(gates[:, 1 * H:2 * H])
        g = jnp.tanh(gates[:, 2 * H:3 * H])
        o = jax.nn.sigmoid(gates[:, 3 * H:4 * H])
        c = f * c + i * g
        h = o * jnp.tanh(c)
    out = h @ params["w_fc"].T + params["b_fc"]
    return out, (h[None, ...], c[None, ...])


if __name__ == "__main__":
    # Small shapes consistent with the module: batch=1 (implied by the default
    # (1,1,H) hidden), seq=8, input_size=4, hidden_size=32, output_size=4.
    input_size, hidden_size, output_size = 4, 32, 4
    seq_len = 8

    key = jax.random.PRNGKey(0)
    ks = jax.random.split(key, 8)
    bound = 1.0 / (hidden_size ** 0.5)   # PyTorch default uniform init range

    params = {
        "w_ih": jax.random.uniform(ks[0], (4 * hidden_size, input_size),
                                   jnp.float32, -bound, bound),
        "w_hh": jax.random.uniform(ks[1], (4 * hidden_size, hidden_size),
                                   jnp.float32, -bound, bound),
        "b_ih": jax.random.uniform(ks[2], (4 * hidden_size,),
                                   jnp.float32, -bound, bound),
        "b_hh": jax.random.uniform(ks[3], (4 * hidden_size,),
                                   jnp.float32, -bound, bound),
        "w_fc": jax.random.uniform(ks[4], (output_size, hidden_size),
                                   jnp.float32, -bound, bound),
        "b_fc": jax.random.uniform(ks[5], (output_size,),
                                   jnp.float32, -bound, bound),
    }

    x = jax.random.normal(ks[6], (1, seq_len, input_size), jnp.float32)

    out, (h_n, c_n) = lstm_model_forward(x, params)
    jax.block_until_ready((out, h_n, c_n))

    out_ref, (h_ref, c_ref) = lstm_model_reference(x, params)
    # bf16 matmul operands inside the kernel -> compare with a loose tolerance
    # (observed error at these magnitudes is ~1e-3).
    assert jnp.allclose(out, out_ref, atol=2e-2), "fc output mismatch"
    assert jnp.allclose(h_n, h_ref, atol=2e-2), "h_n mismatch"
    assert jnp.allclose(c_n, c_ref, atol=2e-2), "c_n mismatch"

    print("KERNEL_OK")
</pallas_src>

<mosaic_0001>
module attributes {stable_mosaic.version = 11 : i64} {
  func.func @lstm_fc_kernel(%arg0: memref<8x16xbf16, #tpu.memory_space<vmem>>, %arg1: memref<80x128xbf16, #tpu.memory_space<vmem>>, %arg2: memref<4x128xf32, #tpu.memory_space<vmem>>, %arg3: memref<3x128xf32, #tpu.memory_space<vmem>>) attributes {dimension_semantics = [], scalar_prefetch = 0 : i64, scratch_operands = 0 : i64, tpu.core_type = #tpu.core_type<tc>} {
    %c0 = arith.constant 0 : index
    %c0_0 = arith.constant 0 : index
    %0 = vector.load %arg1[%c0, %c0_0] : memref<80x128xbf16, #tpu.memory_space<vmem>>, vector<80x128xbf16>
    %1 = vector.extract_strided_slice %0 {offsets = [0, 0], sizes = [16, 128], strides = [1, 1]} : vector<80x128xbf16> to vector<16x128xbf16>
    %2 = vector.extract_strided_slice %0 {offsets = [16, 0], sizes = [32, 128], strides = [1, 1]} : vector<80x128xbf16> to vector<32x128xbf16>
    %3 = vector.extract_strided_slice %0 {offsets = [48, 0], sizes = [32, 4], strides = [1, 1]} : vector<80x128xbf16> to vector<32x4xbf16>
    %c0_1 = arith.constant 0 : index
    %c0_2 = arith.constant 0 : index
    %4 = vector.load %arg2[%c0_1, %c0_2] : memref<4x128xf32, #tpu.memory_space<vmem>>, vector<4x128xf32>
    %5 = vector.extract_strided_slice %4 {offsets = [0, 0], sizes = [1, 128], strides = [1, 1]} : vector<4x128xf32> to vector<1x128xf32>
    %6 = vector.extract_strided_slice %4 {offsets = [1, 0], sizes = [1, 32], strides = [1, 1]} : vector<4x128xf32> to vector<1x32xf32>
    %7 = vector.extract_strided_slice %4 {offsets = [2, 0], sizes = [1, 32], strides = [1, 1]} : vector<4x128xf32> to vector<1x32xf32>
    %8 = vector.extract_strided_slice %4 {offsets = [3, 0], sizes = [1, 4], strides = [1, 1]} : vector<4x128xf32> to vector<1x4xf32>
    %c0_3 = arith.constant 0 : index
    %c0_4 = arith.constant 0 : index
    %9 = vector.load %arg0[%c0_3, %c0_4] : memref<8x16xbf16, #tpu.memory_space<vmem>>, vector<8x16xbf16>
    %cst = arith.constant dense<0.000000e+00> : vector<8x128xf32>
    %10 = tpu.matmul %9, %1, %cst {dimension_numbers = #tpu.dot_dimension_numbers<[1], [0], [0], [1], [0, 0, 1, 1], [], []>} : vector<8x16xbf16>, vector<16x128xbf16>, vector<8x128xf32> -> vector<8x128xf32>
    %11 = vector.broadcast %5 : vector<1x128xf32> to vector<8x128xf32>
    %12 = arith.addf %10, %11 : vector<8x128xf32>
    %13 = vector.extract_strided_slice %12 {offsets = [0, 0], sizes = [1, 128], strides = [1, 1]} : vector<8x128xf32> to vector<1x128xf32>
    %14 = arith.truncf %6 : vector<1x32xf32> to vector<1x32xbf16>
    %cst_5 = arith.constant dense<0.000000e+00> : vector<1x128xf32>
    %15 = tpu.matmul %14, %2, %cst_5 {dimension_numbers = #tpu.dot_dimension_numbers<[1], [0], [0], [1], [0, 0, 1, 1], [], []>} : vector<1x32xbf16>, vector<32x128xbf16>, vector<1x128xf32> -> vector<1x128xf32>
    %16 = arith.addf %13, %15 : vector<1x128xf32>
    %17 = arith.negf %16 : vector<1x128xf32>
    %18 = math.exp %17 : vector<1x128xf32>
    %cst_6 = arith.constant 1.000000e+00 : f32
    %19 = vector.broadcast %cst_6 : f32 to vector<1x128xf32>
    %20 = arith.addf %19, %18 : vector<1x128xf32>
    %21 = arith.divf %19, %20 : vector<1x128xf32>
    %22 = vector.extract_strided_slice %21 {offsets = [0, 0], sizes = [1, 32], strides = [1, 1]} : vector<1x128xf32> to vector<1x32xf32>
    %23 = vector.extract_strided_slice %21 {offsets = [0, 32], sizes = [1, 32], strides = [1, 1]} : vector<1x128xf32> to vector<1x32xf32>
    %24 = vector.extract_strided_slice %21 {offsets = [0, 64], sizes = [1, 32], strides = [1, 1]} : vector<1x128xf32> to vector<1x32xf32>
    %cst_7 = arith.constant 2.000000e+00 : f32
    %25 = vector.broadcast %cst_7 : f32 to vector<1x32xf32>
    %26 = arith.mulf %25, %24 : vector<1x32xf32>
    %cst_8 = arith.constant 1.000000e+00 : f32
    %27 = vector.broadcast %cst_8 : f32 to vector<1x32xf32>
    %28 = arith.subf %26, %27 : vector<1x32xf32>
    %29 = vector.extract_strided_slice %21 {offsets = [0, 96], sizes = [1, 32], strides = [1, 1]} : vector<1x128xf32> to vector<1x32xf32>
    %30 = arith.mulf %23, %7 : vector<1x32xf32>
    %31 = arith.mulf %22, %28 : vector<1x32xf32>
    %32 = arith.addf %30, %31 : vector<1x32xf32>
    %33 = math.tanh %32 : vector<1x32xf32>
    %34 = arith.mulf %29, %33 : vector<1x32xf32>
    %35 = vector.extract_strided_slice %12 {offsets = [1, 0], sizes = [1, 128], strides = [1, 1]} : vector<8x128xf32> to vector<1x128xf32>
    %36 = arith.truncf %34 : vector<1x32xf32> to vector<1x32xbf16>
    %cst_9 = arith.constant dense<0.000000e+00> : vector<1x128xf32>
    %37 = tpu.matmul %36, %2, %cst_9 {dimension_numbers = #tpu.dot_dimension_numbers<[1], [0], [0], [1], [0, 0, 1, 1], [], []>} : vector<1x32xbf16>, vector<32x128xbf16>, vector<1x128xf32> -> vector<1x128xf32>
    %38 = arith.addf %35, %37 : vector<1x128xf32>
    %39 = arith.negf %38 : vector<1x128xf32>
    %40 = math.exp %39 : vector<1x128xf32>
    %cst_10 = arith.constant 1.000000e+00 : f32
    %41 = vector.broadcast %cst_10 : f32 to vector<1x128xf32>
    %42 = arith.addf %41, %40 : vector<1x128xf32>
    %43 = arith.divf %41, %42 : vector<1x128xf32>
    %44 = vector.extract_strided_slice %43 {offsets = [0, 0], sizes = [1, 32], strides = [1, 1]} : vector<1x128xf32> to vector<1x32xf32>
    %45 = vector.extract_strided_slice %43 {offsets = [0, 32], sizes = [1, 32], strides = [1, 1]} : vector<1x128xf32> to vector<1x32xf32>
    %46 = vector.extract_strided_slice %43 {offsets = [0, 64], sizes = [1, 32], strides = [1, 1]} : vector<1x128xf32> to vector<1x32xf32>
    %cst_11 = arith.constant 2.000000e+00 : f32
    %47 = vector.broadcast %cst_11 : f32 to vector<1x32xf32>
    %48 = arith.mulf %47, %46 : vector<1x32xf32>
    %cst_12 = arith.constant 1.000000e+00 : f32
    %49 = vector.broadcast %cst_12 : f32 to vector<1x32xf32>
    %50 = arith.subf %48, %49 : vector<1x32xf32>
    %51 = vector.extract_strided_slice %43 {offsets = [0, 96], sizes = [1, 32], strides = [1, 1]} : vector<1x128xf32> to vector<1x32xf32>
    %52 = arith.mulf %45, %32 : vector<1x32xf32>
    %53 = arith.mulf %44, %50 : vector<1x32xf32>
    %54 = arith.addf %52, %53 : vector<1x32xf32>
    %55 = math.tanh %54 : vector<1x32xf32>
    %56 = arith.mulf %51, %55 : vector<1x32xf32>
    %57 = vector.extract_strided_slice %12 {offsets = [2, 0], sizes = [1, 128], strides = [1, 1]} : vector<8x128xf32> to vector<1x128xf32>
    %58 = arith.truncf %56 : vector<1x32xf32> to vector<1x32xbf16>
    %cst_13 = arith.constant dense<0.000000e+00> : vector<1x128xf32>
    %59 = tpu.matmul %58, %2, %cst_13 {dimension_numbers = #tpu.dot_dimension_numbers<[1], [0], [0], [1], [0, 0, 1, 1], [], []>} : vector<1x32xbf16>, vector<32x128xbf16>, vector<1x128xf32> -> vector<1x128xf32>
    %60 = arith.addf %57, %59 : vector<1x128xf32>
    %61 = arith.negf %60 : vector<1x128xf32>
    %62 = math.exp %61 : vector<1x128xf32>
    %cst_14 = arith.constant 1.000000e+00 : f32
    %63 = vector.broadcast %cst_14 : f32 to vector<1x128xf32>
    %64 = arith.addf %63, %62 : vector<1x128xf32>
    %65 = arith.divf %63, %64 : vector<1x128xf32>
    %66 = vector.extract_strided_slice %65 {offsets = [0, 0], sizes = [1, 32], strides = [1, 1]} : vector<1x128xf32> to vector<1x32xf32>
    %67 = vector.extract_strided_slice %65 {offsets = [0, 32], sizes = [1, 32], strides = [1, 1]} : vector<1x128xf32> to vector<1x32xf32>
    %68 = vector.extract_strided_slice %65 {offsets = [0, 64], sizes = [1, 32], strides = [1, 1]} : vector<1x128xf32> to vector<1x32xf32>
    %cst_15 = arith.constant 2.000000e+00 : f32
    %69 = vector.broadcast %cst_15 : f32 to vector<1x32xf32>
    %70 = arith.mulf %69, %68 : vector<1x32xf32>
    %cst_16 = arith.constant 1.000000e+00 : f32
    %71 = vector.broadcast %cst_16 : f32 to vector<1x32xf32>
    %72 = arith.subf %70, %71 : vector<1x32xf32>
    %73 = vector.extract_strided_slice %65 {offsets = [0, 96], sizes = [1, 32], strides = [1, 1]} : vector<1x128xf32> to vector<1x32xf32>
    %74 = arith.mulf %67, %54 : vector<1x32xf32>
    %75 = arith.mulf %66, %72 : vector<1x32xf32>
    %76 = arith.addf %74, %75 : vector<1x32xf32>
    %77 = math.tanh %76 : vector<1x32xf32>
    %78 = arith.mulf %73, %77 : vector<1x32xf32>
    %79 = vector.extract_strided_slice %12 {offsets = [3, 0], sizes = [1, 128], strides = [1, 1]} : vector<8x128xf32> to vector<1x128xf32>
    %80 = arith.truncf %78 : vector<1x32xf32> to vector<1x32xbf16>
    %cst_17 = arith.constant dense<0.000000e+00> : vector<1x128xf32>
    %81 = tpu.matmul %80, %2, %cst_17 {dimension_numbers = #tpu.dot_dimension_numbers<[1], [0], [0], [1], [0, 0, 1, 1], [], []>} : vector<1x32xbf16>, vector<32x128xbf16>, vector<1x128xf32> -> vector<1x128xf32>
    %82 = arith.addf %79, %81 : vector<1x128xf32>
    %83 = arith.negf %82 : vector<1x128xf32>
    %84 = math.exp %83 : vector<1x128xf32>
    %cst_18 = arith.constant 1.000000e+00 : f32
    %85 = vector.broadcast %cst_18 : f32 to vector<1x128xf32>
    %86 = arith.addf %85, %84 : vector<1x128xf32>
    %87 = arith.divf %85, %86 : vector<1x128xf32>
    %88 = vector.extract_strided_slice %87 {offsets = [0, 0], sizes = [1, 32], strides = [1, 1]} : vector<1x128xf32> to vector<1x32xf32>
    %89 = vector.extract_strided_slice %87 {offsets = [0, 32], sizes = [1, 32], strides = [1, 1]} : vector<1x128xf32> to vector<1x32xf32>
    %90 = vector.extract_strided_slice %87 {offsets = [0, 64], sizes = [1, 32], strides = [1, 1]} : vector<1x128xf32> to vector<1x32xf32>
    %cst_19 = arith.constant 2.000000e+00 : f32
    %91 = vector.broadcast %cst_19 : f32 to vector<1x32xf32>
    %92 = arith.mulf %91, %90 : vector<1x32xf32>
    %cst_20 = arith.constant 1.000000e+00 : f32
    %93 = vector.broadcast %cst_20 : f32 to vector<1x32xf32>
    %94 = arith.subf %92, %93 : vector<1x32xf32>
    %95 = vector.extract_strided_slice %87 {offsets = [0, 96], sizes = [1, 32], strides = [1, 1]} : vector<1x128xf32> to vector<1x32xf32>
    %96 = arith.mulf %89, %76 : vector<1x32xf32>
    %97 = arith.mulf %88, %94 : vector<1x32xf32>
    %98 = arith.addf %96, %97 : vector<1x32xf32>
    %99 = math.tanh %98 : vector<1x32xf32>
    %100 = arith.mulf %95, %99 : vector<1x32xf32>
    %101 = vector.extract_strided_slice %12 {offsets = [4, 0], sizes = [1, 128], strides = [1, 1]} : vector<8x128xf32> to vector<1x128xf32>
    %102 = arith.truncf %100 : vector<1x32xf32> to vector<1x32xbf16>
    %cst_21 = arith.constant dense<0.000000e+00> : vector<1x128xf32>
    %103 = tpu.matmul %102, %2, %cst_21 {dimension_numbers = #tpu.dot_dimension_numbers<[1], [0], [0], [1], [0, 0, 1, 1], [], []>} : vector<1x32xbf16>, vector<32x128xbf16>, vector<1x128xf32> -> vector<1x128xf32>
    %104 = arith.addf %101, %103 : vector<1x128xf32>
    %105 = arith.negf %104 : vector<1x128xf32>
    %106 = math.exp %105 : vector<1x128xf32>
    %cst_22 = arith.constant 1.000000e+00 : f32
    %107 = vector.broadcast %cst_22 : f32 to vector<1x128xf32>
    %108 = arith.addf %107, %106 : vector<1x128xf32>
    %109 = arith.divf %107, %108 : vector<1x128xf32>
    %110 = vector.extract_strided_slice %109 {offsets = [0, 0], sizes = [1, 32], strides = [1, 1]} : vector<1x128xf32> to vector<1x32xf32>
    %111 = vector.extract_strided_slice %109 {offsets = [0, 32], sizes = [1, 32], strides = [1, 1]} : vector<1x128xf32> to vector<1x32xf32>
    %112 = vector.extract_strided_slice %109 {offsets = [0, 64], sizes = [1, 32], strides = [1, 1]} : vector<1x128xf32> to vector<1x32xf32>
    %cst_23 = arith.constant 2.000000e+00 : f32
    %113 = vector.broadcast %cst_23 : f32 to vector<1x32xf32>
    %114 = arith.mulf %113, %112 : vector<1x32xf32>
    %cst_24 = arith.constant 1.000000e+00 : f32
    %115 = vector.broadcast %cst_24 : f32 to vector<1x32xf32>
    %116 = arith.subf %114, %115 : vector<1x32xf32>
    %117 = vector.extract_strided_slice %109 {offsets = [0, 96], sizes = [1, 32], strides = [1, 1]} : vector<1x128xf32> to vector<1x32xf32>
    %118 = arith.mulf %111, %98 : vector<1x32xf32>
    %119 = arith.mulf %110, %116 : vector<1x32xf32>
    %120 = arith.addf %118, %119 : vector<1x32xf32>
    %121 = math.tanh %120 : vector<1x32xf32>
    %122 = arith.mulf %117, %121 : vector<1x32xf32>
    %123 = vector.extract_strided_slice %12 {offsets = [5, 0], sizes = [1, 128], strides = [1, 1]} : vector<8x128xf32> to vector<1x128xf32>
    %124 = arith.truncf %122 : vector<1x32xf32> to vector<1x32xbf16>
    %cst_25 = arith.constant dense<0.000000e+00> : vector<1x128xf32>
    %125 = tpu.matmul %124, %2, %cst_25 {dimension_numbers = #tpu.dot_dimension_numbers<[1], [0], [0], [1], [0, 0, 1, 1], [], []>} : vector<1x32xbf16>, vector<32x128xbf16>, vector<1x128xf32> -> vector<1x128xf32>
    %126 = arith.addf %123, %125 : vector<1x128xf32>
    %127 = arith.negf %126 : vector<1x128xf32>
    %128 = math.exp %127 : vector<1x128xf32>
    %cst_26 = arith.constant 1.000000e+00 : f32
    %129 = vector.broadcast %cst_26 : f32 to vector<1x128xf32>
    %130 = arith.addf %129, %128 : vector<1x128xf32>
    %131 = arith.divf %129, %130 : vector<1x128xf32>
    %132 = vector.extract_strided_slice %131 {offsets = [0, 0], sizes = [1, 32], strides = [1, 1]} : vector<1x128xf32> to vector<1x32xf32>
    %133 = vector.extract_strided_slice %131 {offsets = [0, 32], sizes = [1, 32], strides = [1, 1]} : vector<1x128xf32> to vector<1x32xf32>
    %134 = vector.extract_strided_slice %131 {offsets = [0, 64], sizes = [1, 32], strides = [1, 1]} : vector<1x128xf32> to vector<1x32xf32>
    %cst_27 = arith.constant 2.000000e+00 : f32
    %135 = vector.broadcast %cst_27 : f32 to vector<1x32xf32>
    %136 = arith.mulf %135, %134 : vector<1x32xf32>
    %cst_28 = arith.constant 1.000000e+00 : f32
    %137 = vector.broadcast %cst_28 : f32 to vector<1x32xf32>
    %138 = arith.subf %136, %137 : vector<1x32xf32>
    %139 = vector.extract_strided_slice %131 {offsets = [0, 96], sizes = [1, 32], strides = [1, 1]} : vector<1x128xf32> to vector<1x32xf32>
    %140 = arith.mulf %133, %120 : vector<1x32xf32>
    %141 = arith.mulf %132, %138 : vector<1x32xf32>
    %142 = arith.addf %140, %141 : vector<1x32xf32>
    %143 = math.tanh %142 : vector<1x32xf32>
    %144 = arith.mulf %139, %143 : vector<1x32xf32>
    %145 = vector.extract_strided_slice %12 {offsets = [6, 0], sizes = [1, 128], strides = [1, 1]} : vector<8x128xf32> to vector<1x128xf32>
    %146 = arith.truncf %144 : vector<1x32xf32> to vector<1x32xbf16>
    %cst_29 = arith.constant dense<0.000000e+00> : vector<1x128xf32>
    %147 = tpu.matmul %146, %2, %cst_29 {dimension_numbers = #tpu.dot_dimension_numbers<[1], [0], [0], [1], [0, 0, 1, 1], [], []>} : vector<1x32xbf16>, vector<32x128xbf16>, vector<1x128xf32> -> vector<1x128xf32>
    %148 = arith.addf %145, %147 : vector<1x128xf32>
    %149 = arith.negf %148 : vector<1x128xf32>
    %150 = math.exp %149 : vector<1x128xf32>
    %cst_30 = arith.constant 1.000000e+00 : f32
    %151 = vector.broadcast %cst_30 : f32 to vector<1x128xf32>
    %152 = arith.addf %151, %150 : vector<1x128xf32>
    %153 = arith.divf %151, %152 : vector<1x128xf32>
    %154 = vector.extract_strided_slice %153 {offsets = [0, 0], sizes = [1, 32], strides = [1, 1]} : vector<1x128xf32> to vector<1x32xf32>
    %155 = vector.extract_strided_slice %153 {offsets = [0, 32], sizes = [1, 32], strides = [1, 1]} : vector<1x128xf32> to vector<1x32xf32>
    %156 = vector.extract_strided_slice %153 {offsets = [0, 64], sizes = [1, 32], strides = [1, 1]} : vector<1x128xf32> to vector<1x32xf32>
    %cst_31 = arith.constant 2.000000e+00 : f32
    %157 = vector.broadcast %cst_31 : f32 to vector<1x32xf32>
    %158 = arith.mulf %157, %156 : vector<1x32xf32>
    %cst_32 = arith.constant 1.000000e+00 : f32
    %159 = vector.broadcast %cst_32 : f32 to vector<1x32xf32>
    %160 = arith.subf %158, %159 : vector<1x32xf32>
    %161 = vector.extract_strided_slice %153 {offsets = [0, 96], sizes = [1, 32], strides = [1, 1]} : vector<1x128xf32> to vector<1x32xf32>
    %162 = arith.mulf %155, %142 : vector<1x32xf32>
    %163 = arith.mulf %154, %160 : vector<1x32xf32>
    %164 = arith.addf %162, %163 : vector<1x32xf32>
    %165 = math.tanh %164 : vector<1x32xf32>
    %166 = arith.mulf %161, %165 : vector<1x32xf32>
    %167 = vector.extract_strided_slice %12 {offsets = [7, 0], sizes = [1, 128], strides = [1, 1]} : vector<8x128xf32> to vector<1x128xf32>
    %168 = arith.truncf %166 : vector<1x32xf32> to vector<1x32xbf16>
    %cst_33 = arith.constant dense<0.000000e+00> : vector<1x128xf32>
    %169 = tpu.matmul %168, %2, %cst_33 {dimension_numbers = #tpu.dot_dimension_numbers<[1], [0], [0], [1], [0, 0, 1, 1], [], []>} : vector<1x32xbf16>, vector<32x128xbf16>, vector<1x128xf32> -> vector<1x128xf32>
    %170 = arith.addf %167, %169 : vector<1x128xf32>
    %171 = arith.negf %170 : vector<1x128xf32>
    %172 = math.exp %171 : vector<1x128xf32>
    %cst_34 = arith.constant 1.000000e+00 : f32
    %173 = vector.broadcast %cst_34 : f32 to vector<1x128xf32>
    %174 = arith.addf %173, %172 : vector<1x128xf32>
    %175 = arith.divf %173, %174 : vector<1x128xf32>
    %176 = vector.extract_strided_slice %175 {offsets = [0, 0], sizes = [1, 32], strides = [1, 1]} : vector<1x128xf32> to vector<1x32xf32>
    %177 = vector.extract_strided_slice %175 {offsets = [0, 32], sizes = [1, 32], strides = [1, 1]} : vector<1x128xf32> to vector<1x32xf32>
    %178 = vector.extract_strided_slice %175 {offsets = [0, 64], sizes = [1, 32], strides = [1, 1]} : vector<1x128xf32> to vector<1x32xf32>
    %cst_35 = arith.constant 2.000000e+00 : f32
    %179 = vector.broadcast %cst_35 : f32 to vector<1x32xf32>
    %180 = arith.mulf %179, %178 : vector<1x32xf32>
    %cst_36 = arith.constant 1.000000e+00 : f32
    %181 = vector.broadcast %cst_36 : f32 to vector<1x32xf32>
    %182 = arith.subf %180, %181 : vector<1x32xf32>
    %183 = vector.extract_strided_slice %175 {offsets = [0, 96], sizes = [1, 32], strides = [1, 1]} : vector<1x128xf32> to vector<1x32xf32>
    %184 = arith.mulf %177, %164 : vector<1x32xf32>
    %185 = arith.mulf %176, %182 : vector<1x32xf32>
    %186 = arith.addf %184, %185 : vector<1x32xf32>
    %187 = math.tanh %186 : vector<1x32xf32>
    %188 = arith.mulf %183, %187 : vector<1x32xf32>
    %189 = arith.truncf %188 : vector<1x32xf32> to vector<1x32xbf16>
    %cst_37 = arith.constant dense<0.000000e+00> : vector<1x4xf32>
    %190 = tpu.matmul %189, %3, %cst_37 {dimension_numbers = #tpu.dot_dimension_numbers<[1], [0], [0], [1], [0, 0, 1, 1], [], []>} : vector<1x32xbf16>, vector<32x4xbf16>, vector<1x4xf32> -> vector<1x4xf32>
    %191 = arith.addf %190, %8 : vector<1x4xf32>
    %cst_38 = arith.constant 0.000000e+00 : f32
    %192 = vector.broadcast %cst_38 : f32 to vector<1x124xf32>
    %cst_39 = arith.constant 0.000000e+00 : f32
    %193 = vector.broadcast %cst_39 : f32 to vector<1x96xf32>
    %194 = tpu.concatenate %191, %192 in 1 : vector<1x4xf32>, vector<1x124xf32> -> vector<1x128xf32>
    %195 = tpu.concatenate %188, %193 in 1 : vector<1x32xf32>, vector<1x96xf32> -> vector<1x128xf32>
    %196 = tpu.concatenate %186, %193 in 1 : vector<1x32xf32>, vector<1x96xf32> -> vector<1x128xf32>
    %197 = tpu.concatenate %194, %195, %196 in 0 : vector<1x128xf32>, vector<1x128xf32>, vector<1x128xf32> -> vector<3x128xf32>
    %c0_40 = arith.constant 0 : index
    %c0_41 = arith.constant 0 : index
    %198 = vector.load %arg3[%c0_40, %c0_41] : memref<3x128xf32, #tpu.memory_space<vmem>>, vector<3x128xf32>
    tpu.vector_store %arg3[%c0_40, %c0_41], %197 {strides = array<i32>} : memref<3x128xf32, #tpu.memory_space<vmem>>, vector<3x128xf32>,
    return
  }
}

</mosaic_0001>

<bundles_post_ra>
// kernel: tpu_custom_call.1
= control target key start
LH: loop header
LB: loop body
LE: loop exit
PB: predicated region body
PF: predicated region fallthrough
CT: control target
= control target key end

     0   :  { %8 = vsyncpa [#allocation3], 0  ;;  %s1329_s0 = inlined_call_operand.hbm [shape: bf16[8,16], index: 0, kind: input, shape index: {}]   ;;  %s1330_s1 = inlined_call_operand.hbm [shape: bf16[80,128], index: 1, kind: input, shape index: {}]   ;;  %s1331_s2 = inlined_call_operand.hbm [shape: f32[4,128], index: 2, kind: input, shape index: {}]   ;;  %s1332_s3 = inlined_call_operand.hbm [shape: f32[3,128], index: 3, kind: output, shape index: {}]  }
   0x1   :  { %9 = vsyncpa [#allocation6], 0 }
   0x2   :  { %10 = vsyncpa [#allocation4], 0  ;;  %s1164_s12 = smov [#allocation5]  }
   0x3   :  { %s26_s13 = sshll.u32 %s1164_s12, 4  ;;  %s27_s13 = int_to_ptr.vmem [resolvable:$true] %s26_s13 }
   0x4   :  { %s1086_s14 = scalar_lea.vmem %s27_s13, 640  ;;  %p1091_p1 = scmp.lt.s32.totalorder %s27_s13, %s27_s13 }
   0x5   :  { %p1087_p0 = scmp.ne.s32.totalorder %s27_s13, %s1086_s14  ;;  %p1092_p2 = scmp.lt.s32.totalorder %s1086_s14, %s1086_s14 }
   0x7   :  { %p1093_p3 = por %p1092_p2, %p1091_p1 }
   0x9   :  { %p1094_p4 = pnand %p1093_p3, %p1087_p0 }
   0xb   :  { %1097 = shalt.err (!%p1094_p4)
}
   0xc   :  { %s1165_s15 = smov 64   ;;  %s1166_s16 = smov 4  }
   0xd   :  { %32 = dma.hbm_to_vmem [thread:$0]  %s1330_s1, 640, %s27_s13, [#allocation6], %s1165_s15, %s1165_s15, %s1166_s16  }
   0xe   :  { %s1167_s19 = smov [#allocation2]   ;;  %s1168_s21 = smov [#allocation7]  }
   0xf   :  { %s17_s20 = sshll.u32 %s1167_s19, 4  ;;  %s39_s22 = sshll.u32 %s1168_s21, 4  ;;  %s18_s20 = int_to_ptr.vmem [resolvable:$true] %s17_s20  ;;  %s40_s22 = int_to_ptr.vmem [resolvable:$true] %s39_s22 }
  0x10   :  { %s1106_s23 = scalar_lea.vmem %s18_s20, 64  ;;  %p1111_p6 = scmp.lt.s32.totalorder %s18_s20, %s18_s20 }
  0x11   :  { %p1107_p5 = scmp.ne.s32.totalorder %s18_s20, %s1106_s23  ;;  %p1112_p7 = scmp.lt.s32.totalorder %s1106_s23, %s1106_s23 }
  0x13   :  { %p1113_p8 = por %p1112_p7, %p1111_p6 }
  0x15   :  { %p1114_p9 = pnand %p1113_p8, %p1107_p5 }
  0x17   :  { %1117 = shalt.err (!%p1114_p9)
}
  0x18   :  { %20 = dma.hbm_to_vmem [thread:$0]  %s1329_s0, 64, %s18_s20, [#allocation3]  }
  0x19   :  { %s1126_s26 = scalar_lea.vmem %s40_s22, 64  ;;  %p1131_p11 = scmp.lt.s32.totalorder %s40_s22, %s40_s22 }
  0x1a   :  { %p1127_p10 = scmp.ne.s32.totalorder %s40_s22, %s1126_s26  ;;  %p1132_p12 = scmp.lt.s32.totalorder %s1126_s26, %s1126_s26 }
  0x1c   :  { %p1133_p13 = por %p1132_p12, %p1131_p11 }
  0x1e   :  { %p1134_p0 = pnand %p1133_p13, %p1127_p10 }
  0x20   :  { %1137 = shalt.err (!%p1134_p0)
}
  0x21   :  { %42 = dma.hbm_to_vmem [thread:$0]  %s1331_s2, 64, %s40_s22, [#allocation6]  }
  0x22   :  { %1158 = dma.done.wait [#allocation3], 64  }
  0x23   :  { %1159 = vsyncadd [#allocation3], 4294967232 }
  0x24   :  { %1160 = dma.done.wait [#allocation6], 704  }
  0x25   :  { %1161 = vsyncadd [#allocation6], 4294966592  ;;  %v1169_v0 = vmov 0.0   ;;  %vm1170_vm0 = vmmov 0   ;;  %v1025_v1 = vld [vmem:[#allocation5] sm:$0xff]   ;;  %v1211_v2 = vld [vmem:[#allocation5 + $0x10] sm:$0xff]   ;;  %v65_v8 = vlaneseq }
  0x26   :  { %937 = vmatprep.subr.bf16.mxu0 %v1169_v0  ;;  %943 = vmatprep.subr.bf16.mxu1 %v1169_v0  ;;  %vm75_vm1 = vcmask 130048   ;;  %v64_v3 = vld [vmem:[#allocation2] sm:$0xf]  ;;  %v1214_v4 = vld [vmem:[#allocation5 + $0x8] sm:$0xff]   ;;  %vm135_vm2 = vcmask 261120   ;;  %s1171_s0 = smov 32  }
  0x27   :  { %939 = vmatprep.mubr.msk.bf16.mxu0 %vm1170_vm0, %v1169_v0  ;;  %947 = vmatprep.mubr.msk.bf16.mxu1 %vm1170_vm0, %v1169_v0  ;;  %v1216_v5 = vld [vmem:[#allocation7] sm:$0xf]  ;;  %v66_v9 = vshrl.u32 %v65_v8, 7  ;;  %s1172_s2 = smov 96   ;;  %vm838_vm3 = vcmask 31744   ;;  %vm856_vm4 = vcmask 1040384  }
  0x28   :  { %938 = vmatpush3.bf16.msra.mxu0 %v1025_v1  ;;  %944 = vmatpush3.bf16.msra.mxu1 %v1211_v2  ;;  %v119_v6 = vpack.c.bf16 %v1216_v5, %v1216_v5  ;;  %v189_v28 = vrot.slane %v1216_v5, 2  ;;  %s1173_s28 = smov [#allocation8]   ;;  %vm858_vm5 = vcmask 1041408  }
  0x29   :  { %951 = vmatprep.subr.bf16.mxu0 %v1169_v0  ;;  %945 = vmatprep.subr.bf16.mxu1 %v1169_v0  ;;  %v67_v10 = vsub.s32 0, %v66_v9  ;;  %s867_s29 = sshll.u32 %s1173_s28, 4  ;;  %s868_s29 = int_to_ptr.vmem [resolvable:$true] %s867_s29 }
  0x2a   :  { %v121_v7 = vshrl.u32 %v119_v6, 16  ;;  %s1138_s30 = scalar_lea.vmem %s868_s29, 64  ;;  %p1143_p2 = scmp.lt.s32.totalorder %s868_s29, %s868_s29 }
  0x2b   :  { %940 = vmatmul.mubr.msk.bf16.vlgmr.msra.gmra.mxu0 %vm75_vm1, %v64_v3  ;;  %v68_v11 = vrot.slane %v1216_v5, %v67_v10  ;;  %p1139_p1 = scmp.ne.s32.totalorder %s868_s29, %s1138_s30  ;;  %p1144_p3 = scmp.lt.s32.totalorder %s1138_s30, %s1138_s30 }
  0x2c   :  { %952 = vmatpush3.bf16.msra.mxu0 %v1211_v2  ;;  %955 = vmatprep.mubr.msk.bf16.mxu0 %vm1170_vm0, %v1169_v0 }
  0x2d   :  { %946 = vmatpush3.bf16.msra.mxu1 %v1214_v4  ;;  %953 = vmatprep.subr.bf16.mxu0 %v1169_v0  ;;  %p1145_p4 = por %p1144_p3, %p1143_p2 }
  0x2e   :  { %959 = vmatprep.subr.bf16.mxu1 %v1169_v0 }
  0x2f   :  { %p1146_p5 = pnand %p1145_p4, %p1139_p1 }
  0x30   :  { %948 = vmatmul.mubr.msk.bf16.vlgmr.msra.gmra.mxu1 %vm135_vm2, %v121_v7  ;;  %954 = vmatpush3.bf16.msra.mxu0 %v1214_v4 }
  0x31   :  { %960 = vmatpush3.bf16.msra.mxu1 %v1211_v2  ;;  %963 = vmatprep.mubr.msk.bf16.mxu1 %vm1170_vm0, %v1169_v0 }
  0x32   :  { %961 = vmatprep.subr.bf16.mxu1 %v1169_v0  ;;  %967 = vmatprep.subr.bf16.mxu0 %v1169_v0 }
  0x35   :  { %962 = vmatpush3.bf16.msra.mxu1 %v1214_v4 }
  0x36   :  { %975 = vmatprep.subr.bf16.mxu1 %v1169_v0 }
  0xeb   :  { %v113_v12 = vpop.f32.mrf.mxu0 }
  0xec   :  { %v1238_v13 = vadd.f32 %v113_v12, %v68_v11 }
  0xed   :  { %v941_v14 = vpop.f32.mrf.mxu0 }
  0xef   :  { %v116_v15 = vpop.f32.mrf.mxu0 }
  0xf0   :  { %v173_v16 = vpop.f32.mrf.mxu1 }
  0xf1   :  { %v179_v17 = vadd.f32 %v173_v16, %v1238_v13  ;;  %v942_v18 = vpop.f32.mrf.mxu0 }
  0xf2   :  { %v949_v19 = vpop.f32.mrf.mxu1 }
  0xf3   :  { %v882_v20 = vmul.f32 -1.442695, %v179_v17 }
  0xf4   :  { %v176_v21 = vpop.f32.mrf.mxu1 }
  0xf5   :  { %1030 = vpow2.f32 %v882_v20 }
  0xf6   :  { %v950_v22 = vpop.f32.mrf.mxu1 }
 0x102   :  { %v1031_v23 = vpop.eup %1030 }
 0x103   :  { %v183_v24 = vadd.f32 1.0, %v1031_v23 }
 0x105   :  { %1032 = vrcp.f32 %v183_v24 }
 0x112   :  { %v1033_v25 = vpop.eup %1032 }
 0x113   :  { %v186_v26 = vmul.f32 2.0, %v1033_v25 }
 0x115   :  { %v883_v27 = vadd.f32 -1.0, %v186_v26 }
 0x117   :  { %195 = vrot.lane.b32.xlu0 %v883_v27, %s1165_s15 }
 0x11b   :  { %190 = vrot.lane.b32.xlu0 %v189_v28, %s1171_s0 }
 0x189   :  { %v196_v29 = vpop.permute.xlu0 %195 }
 0x18a   :  { %v198_v30 = vmul.f32 %v1033_v25, %v196_v29 }
 0x18c   :  { %200 = vrot.lane.b32.xlu1 %v198_v30, %s1171_s0 }
 0x18d   :  { %v191_v31 = vpop.permute.xlu0 %190 }
 0x18e   :  { %v193_v32 = vmul.f32 %v1033_v25, %v191_v31 }
 0x1fe   :  { %v201_v33 = vpop.permute.xlu1 %200 }
 0x1ff   :  { %v203_v34 = vadd.f32 %v201_v33, %v193_v32 }
 0x201   :  { %1034 = vtanh.f32 %v203_v34  ;;  %v270_v54 = vrot.slane %v203_v34, 7 }
 0x20e   :  { %v1035_v35 = vpop.eup %1034 }
 0x20f   :  { %206 = vrot.lane.b32.xlu1 %v1035_v35, %s1165_s15 }
 0x281   :  { %v207_v36 = vpop.permute.xlu1 %206 }
 0x282   :  { %v209_v37 = vmul.f32 %v1033_v25, %v207_v36 }
 0x284   :  { %v210_v38 = vpack.c.bf16 %v209_v37, %v209_v37 }
 0x286   :  { %212 = vrot.lane.b32.xlu0 %v210_v38, %s1171_s0 }
 0x2f8   :  { %v213_v39 = vpop.permute.xlu0 %212 }
 0x2f9   :  { %956 = vmatmul.mubr.msk.bf16.vlgmr.msra.gmra.mxu0 %vm135_vm2, %v213_v39 }
 0x2fa   :  { %968 = vmatpush3.bf16.msra.mxu0 %v1211_v2  ;;  %971 = vmatprep.mubr.msk.bf16.mxu0 %vm1170_vm0, %v1169_v0 }
 0x2fb   :  { %969 = vmatprep.subr.bf16.mxu0 %v1169_v0 }
 0x2fe   :  { %970 = vmatpush3.bf16.msra.mxu0 %v1214_v4 }
 0x2ff   :  { %983 = vmatprep.subr.bf16.mxu0 %v1169_v0 }
 0x3b9   :  { %v251_v40 = vpop.f32.mrf.mxu0 }
 0x3ba   :  { %v258_v41 = vrot.slane %v251_v40, 7 }
 0x3bb   :  { %v957_v42 = vpop.f32.mrf.mxu0 }
 0x3bc   :  { %v260_v43 = vadd.f32 %v258_v41, %v1238_v13 }
 0x3bd   :  { %v254_v44 = vpop.f32.mrf.mxu0 }
 0x3be   :  { %v885_v45 = vmul.f32 -1.442695, %v260_v43 }
 0x3bf   :  { %v958_v46 = vpop.f32.mrf.mxu0 }
 0x3c0   :  { %1036 = vpow2.f32 %v885_v45 }
 0x3cd   :  { %v1037_v47 = vpop.eup %1036 }
 0x3ce   :  { %v264_v48 = vadd.f32 1.0, %v1037_v47 }
 0x3d0   :  { %1038 = vrcp.f32 %v264_v48 }
 0x3dd   :  { %v1039_v49 = vpop.eup %1038 }
 0x3de   :  { %v267_v50 = vmul.f32 2.0, %v1039_v49  ;;  %v272_v55 = vmul.f32 %v1039_v49, %v270_v54 }
 0x3e0   :  { %v886_v51 = vadd.f32 -1.0, %v267_v50 }
 0x3e2   :  { %274 = vrot.lane.b32.xlu1 %v886_v51, %s1165_s15 }
 0x454   :  { %v275_v52 = vpop.permute.xlu1 %274 }
 0x455   :  { %v277_v53 = vmul.f32 %v1039_v49, %v275_v52 }
 0x457   :  { %279 = vrot.lane.b32.xlu0 %v277_v53, %s1171_s0 }
 0x4c9   :  { %v280_v56 = vpop.permute.xlu0 %279 }
 0x4ca   :  { %v282_v57 = vadd.f32 %v280_v56, %v272_v55 }
 0x4cc   :  { %1040 = vtanh.f32 %v282_v57  ;;  %v351_v19 = vrot.slane %v282_v57, 7 }
 0x4d9   :  { %v1041_v58 = vpop.eup %1040 }
 0x4da   :  { %285 = vrot.lane.b32.xlu1 %v1041_v58, %s1165_s15 }
 0x54c   :  { %v286_v59 = vpop.permute.xlu1 %285 }
 0x54d   :  { %v288_v60 = vmul.f32 %v1039_v49, %v286_v59 }
 0x54f   :  { %v289_v61 = vpack.c.bf16 %v288_v60, %v288_v60 }
 0x551   :  { %v291_v62 = vshrl.u32 %v289_v61, 16 }
 0x553   :  { %293 = vrot.lane.b32.xlu0 %v291_v62, %s1171_s0 }
 0x5c5   :  { %v294_v63 = vpop.permute.xlu0 %293 }
 0x5c6   :  { %964 = vmatmul.mubr.msk.bf16.vlgmr.msra.gmra.mxu1 %vm135_vm2, %v294_v63 }
 0x5c7   :  { %976 = vmatpush3.bf16.msra.mxu1 %v1211_v2  ;;  %979 = vmatprep.mubr.msk.bf16.mxu1 %vm1170_vm0, %v1169_v0 }
 0x5c8   :  { %977 = vmatprep.subr.bf16.mxu1 %v1169_v0 }
 0x5cb   :  { %978 = vmatpush3.bf16.msra.mxu1 %v1214_v4 }
 0x5cc   :  { %991 = vmatprep.subr.bf16.mxu1 %v1169_v0 }
 0x686   :  { %v332_v1 = vpop.f32.mrf.mxu1 }
 0x687   :  { %v339_v3 = vrot.slane %v332_v1, 6 }
 0x688   :  { %v965_v6 = vpop.f32.mrf.mxu1 }
 0x689   :  { %v341_v7 = vadd.f32 %v339_v3, %v1238_v13 }
 0x68a   :  { %v335_v8 = vpop.f32.mrf.mxu1 }
 0x68b   :  { %v888_v9 = vmul.f32 -1.442695, %v341_v7 }
 0x68c   :  { %v966_v10 = vpop.f32.mrf.mxu1 }
 0x68d   :  { %1042 = vpow2.f32 %v888_v9 }
 0x69a   :  { %v1043_v11 = vpop.eup %1042 }
 0x69b   :  { %v345_v12 = vadd.f32 1.0, %v1043_v11 }
 0x69d   :  { %1044 = vrcp.f32 %v345_v12 }
 0x6aa   :  { %v1045_v14 = vpop.eup %1044 }
 0x6ab   :  { %v348_v15 = vmul.f32 2.0, %v1045_v14  ;;  %v353_v20 = vmul.f32 %v1045_v14, %v351_v19 }
 0x6ad   :  { %v889_v16 = vadd.f32 -1.0, %v348_v15 }
 0x6af   :  { %355 = vrot.lane.b32.xlu1 %v889_v16, %s1165_s15 }
 0x721   :  { %v356_v17 = vpop.permute.xlu1 %355 }
 0x722   :  { %v358_v18 = vmul.f32 %v1045_v14, %v356_v17 }
 0x724   :  { %360 = vrot.lane.b32.xlu0 %v358_v18, %s1171_s0 }
 0x796   :  { %v361_v21 = vpop.permute.xlu0 %360 }
 0x797   :  { %v363_v22 = vadd.f32 %v361_v21, %v353_v20 }
 0x799   :  { %1046 = vtanh.f32 %v363_v22  ;;  %v431_v43 = vrot.slane %v363_v22, 7 }
 0x7a6   :  { %v1047_v23 = vpop.eup %1046 }
 0x7a7   :  { %366 = vrot.lane.b32.xlu1 %v1047_v23, %s1165_s15 }
 0x819   :  { %v367_v24 = vpop.permute.xlu1 %366 }
 0x81a   :  { %v369_v25 = vmul.f32 %v1045_v14, %v367_v24 }
 0x81c   :  { %v370_v26 = vpack.c.bf16 %v369_v25, %v369_v25 }
 0x81e   :  { %v372_v27 = vrot.slane %v370_v26, 1 }
 0x820   :  { %373 = vrot.lane.b32.xlu0 %v372_v27, %s1171_s0 }
 0x892   :  { %v374_v28 = vpop.permute.xlu0 %373 }
 0x893   :  { %972 = vmatmul.mubr.msk.bf16.vlgmr.msra.gmra.mxu0 %vm135_vm2, %v374_v28 }
 0x894   :  { %984 = vmatpush3.bf16.msra.mxu0 %v1211_v2  ;;  %987 = vmatprep.mubr.msk.bf16.mxu0 %vm1170_vm0, %v1169_v0 }
 0x895   :  { %985 = vmatprep.subr.bf16.mxu0 %v1169_v0 }
 0x898   :  { %986 = vmatpush3.bf16.msra.mxu0 %v1214_v4 }
 0x899   :  { %999 = vmatprep.subr.bf16.mxu0 %v1169_v0 }
 0x953   :  { %v412_v29 = vpop.f32.mrf.mxu0 }
 0x954   :  { %v419_v30 = vrot.slane %v412_v29, 5 }
 0x955   :  { %v973_v31 = vpop.f32.mrf.mxu0 }
 0x956   :  { %v421_v32 = vadd.f32 %v419_v30, %v1238_v13 }
 0x957   :  { %v415_v33 = vpop.f32.mrf.mxu0 }
 0x958   :  { %v891_v34 = vmul.f32 -1.442695, %v421_v32 }
 0x959   :  { %v974_v35 = vpop.f32.mrf.mxu0 }
 0x95a   :  { %1048 = vpow2.f32 %v891_v34 }
 0x967   :  { %v1049_v36 = vpop.eup %1048 }
 0x968   :  { %v425_v37 = vadd.f32 1.0, %v1049_v36 }
 0x96a   :  { %1050 = vrcp.f32 %v425_v37 }
 0x977   :  { %v1051_v38 = vpop.eup %1050 }
 0x978   :  { %v428_v39 = vmul.f32 2.0, %v1051_v38  ;;  %v433_v44 = vmul.f32 %v1051_v38, %v431_v43 }
 0x97a   :  { %v892_v40 = vadd.f32 -1.0, %v428_v39 }
 0x97c   :  { %435 = vrot.lane.b32.xlu1 %v892_v40, %s1165_s15 }
 0x9ee   :  { %v436_v41 = vpop.permute.xlu1 %435 }
 0x9ef   :  { %v438_v42 = vmul.f32 %v1051_v38, %v436_v41 }
 0x9f1   :  { %440 = vrot.lane.b32.xlu0 %v438_v42, %s1171_s0 }
 0xa63   :  { %v441_v45 = vpop.permute.xlu0 %440 }
 0xa64   :  { %v443_v46 = vadd.f32 %v441_v45, %v433_v44 }
 0xa66   :  { %1052 = vtanh.f32 %v443_v46  ;;  %v513_v8 = vrot.slane %v443_v46, 7 }
 0xa73   :  { %v1053_v47 = vpop.eup %1052 }
 0xa74   :  { %446 = vrot.lane.b32.xlu1 %v1053_v47, %s1165_s15 }
 0xae6   :  { %v447_v48 = vpop.permute.xlu1 %446 }
 0xae7   :  { %v449_v49 = vmul.f32 %v1051_v38, %v447_v48 }
 0xae9   :  { %v450_v50 = vpack.c.bf16 %v449_v49, %v449_v49 }
 0xaeb   :  { %v452_v51 = vshrl.u32 %v450_v50, 16 }
 0xaed   :  { %v454_v52 = vrot.slane %v452_v51, 1 }
 0xaef   :  { %455 = vrot.lane.b32.xlu0 %v454_v52, %s1171_s0 }
 0xb61   :  { %v456_v53 = vpop.permute.xlu0 %455 }
 0xb62   :  { %980 = vmatmul.mubr.msk.bf16.vlgmr.msra.gmra.mxu1 %vm135_vm2, %v456_v53 }
 0xb63   :  { %992 = vmatpush3.bf16.msra.mxu1 %v1211_v2  ;;  %995 = vmatprep.mubr.msk.bf16.mxu1 %vm1170_vm0, %v1169_v0 }
 0xb64   :  { %993 = vmatprep.subr.bf16.mxu1 %v1169_v0 }
 0xb67   :  { %994 = vmatpush3.bf16.msra.mxu1 %v1214_v4 }
 0xb68   :  { %1007 = vmatprep.subr.bf16.mxu1 %v1169_v0 }
 0xc22   :  { %v494_v54 = vpop.f32.mrf.mxu1 }
 0xc23   :  { %v501_v55 = vrot.slane %v494_v54, 4 }
 0xc24   :  { %v981_v56 = vpop.f32.mrf.mxu1 }
 0xc25   :  { %v503_v57 = vadd.f32 %v501_v55, %v1238_v13 }
 0xc26   :  { %v497_v58 = vpop.f32.mrf.mxu1 }
 0xc27   :  { %v894_v59 = vmul.f32 -1.442695, %v503_v57 }
 0xc28   :  { %v982_v60 = vpop.f32.mrf.mxu1 }
 0xc29   :  { %1054 = vpow2.f32 %v894_v59 }
 0xc36   :  { %v1055_v61 = vpop.eup %1054 }
 0xc37   :  { %v507_v62 = vadd.f32 1.0, %v1055_v61 }
 0xc39   :  { %1056 = vrcp.f32 %v507_v62 }
 0xc46   :  { %v1057_v63 = vpop.eup %1056 }
 0xc47   :  { %v510_v1 = vmul.f32 2.0, %v1057_v63  ;;  %v515_v9 = vmul.f32 %v1057_v63, %v513_v8 }
 0xc49   :  { %v895_v3 = vadd.f32 -1.0, %v510_v1 }
 0xc4b   :  { %517 = vrot.lane.b32.xlu1 %v895_v3, %s1165_s15 }
 0xcbd   :  { %v518_v6 = vpop.permute.xlu1 %517 }
 0xcbe   :  { %v520_v7 = vmul.f32 %v1057_v63, %v518_v6 }
 0xcc0   :  { %522 = vrot.lane.b32.xlu0 %v520_v7, %s1171_s0 }
 0xd32   :  { %v523_v10 = vpop.permute.xlu0 %522 }
 0xd33   :  { %v525_v11 = vadd.f32 %v523_v10, %v515_v9 }
 0xd35   :  { %1058 = vtanh.f32 %v525_v11 }
 0xd42   :  { %v1059_v12 = vpop.eup %1058 }
 0xd43   :  { %528 = vrot.lane.b32.xlu1 %v1059_v12, %s1165_s15 }
 0xdb5   :  { %v529_v14 = vpop.permute.xlu1 %528 }
 0xdb6   :  { %v531_v15 = vmul.f32 %v1057_v63, %v529_v14 }
 0xdb8   :  { %v532_v16 = vpack.c.bf16 %v531_v15, %v531_v15 }
 0xdba   :  { %v534_v17 = vrot.slane %v532_v16, 2 }
 0xdbc   :  { %535 = vrot.lane.b32.xlu0 %v534_v17, %s1171_s0 }
 0xe2e   :  { %v536_v18 = vpop.permute.xlu0 %535 }
 0xe2f   :  { %988 = vmatmul.mubr.msk.bf16.vlgmr.msra.gmra.mxu0 %vm135_vm2, %v536_v18 }
 0xe30   :  { %1000 = vmatpush3.bf16.msra.mxu0 %v1211_v2  ;;  %1003 = vmatprep.mubr.msk.bf16.mxu0 %vm1170_vm0, %v1169_v0 }
 0xe31   :  { %1001 = vmatprep.subr.bf16.mxu0 %v1169_v0 }
 0xe34   :  { %1002 = vmatpush3.bf16.msra.mxu0 %v1214_v4  ;;  %v593_v4 = vrot.slane %v525_v11, 7 }
 0xeef   :  { %v574_v19 = vpop.f32.mrf.mxu0 }
 0xef0   :  { %v581_v20 = vrot.slane %v574_v19, 3 }
 0xef1   :  { %v989_v21 = vpop.f32.mrf.mxu0 }
 0xef2   :  { %v583_v22 = vadd.f32 %v581_v20, %v1238_v13 }
 0xef3   :  { %v577_v23 = vpop.f32.mrf.mxu0 }
 0xef4   :  { %v897_v24 = vmul.f32 -1.442695, %v583_v22 }
 0xef5   :  { %v990_v25 = vpop.f32.mrf.mxu0 }
 0xef6   :  { %1060 = vpow2.f32 %v897_v24  ;;  %v1028_v25 = vld [vmem:[#allocation5 + $0x20] sm:$0xff]  }
 0xf03   :  { %v1061_v26 = vpop.eup %1060 }
 0xf04   :  { %v587_v27 = vadd.f32 1.0, %v1061_v26  ;;  %v1029_v26 = vld [vmem:[#allocation5 + $0x18] sm:$0xff]  }
 0xf06   :  { %1062 = vrcp.f32 %v587_v27 }
 0xf13   :  { %v1063_v2 = vpop.eup %1062 }
 0xf14   :  { %v590_v28 = vmul.f32 2.0, %v1063_v2  ;;  %v595_v32 = vmul.f32 %v1063_v2, %v593_v4 }
 0xf16   :  { %v898_v29 = vadd.f32 -1.0, %v590_v28 }
 0xf18   :  { %597 = vrot.lane.b32.xlu1 %v898_v29, %s1165_s15 }
 0xf8a   :  { %v598_v30 = vpop.permute.xlu1 %597 }
 0xf8b   :  { %v600_v31 = vmul.f32 %v1063_v2, %v598_v30 }
 0xf8d   :  { %602 = vrot.lane.b32.xlu0 %v600_v31, %s1171_s0 }
 0xfff   :  { %v603_v33 = vpop.permute.xlu0 %602 }
0x1000   :  { %v605_v34 = vadd.f32 %v603_v33, %v595_v32 }
0x1002   :  { %1064 = vtanh.f32 %v605_v34  ;;  %v675_v56 = vrot.slane %v605_v34, 7 }
0x100f   :  { %v1065_v35 = vpop.eup %1064 }
0x1010   :  { %608 = vrot.lane.b32.xlu1 %v1065_v35, %s1165_s15 }
0x1082   :  { %v609_v36 = vpop.permute.xlu1 %608 }
0x1083   :  { %v611_v37 = vmul.f32 %v1063_v2, %v609_v36 }
0x1085   :  { %v612_v38 = vpack.c.bf16 %v611_v37, %v611_v37 }
0x1087   :  { %v614_v39 = vshrl.u32 %v612_v38, 16 }
0x1089   :  { %v616_v40 = vrot.slane %v614_v39, 2 }
0x108b   :  { %617 = vrot.lane.b32.xlu0 %v616_v40, %s1171_s0 }
0x10fd   :  { %v618_v41 = vpop.permute.xlu0 %617 }
0x10fe   :  { %996 = vmatmul.mubr.msk.bf16.vlgmr.msra.gmra.mxu1 %vm135_vm2, %v618_v41 }
0x10ff   :  { %1011 = vmatprep.mubr.msk.bf16.mxu1 %vm1170_vm0, %v1169_v0  ;;  %1008 = vmatpush3.bf16.msra.mxu1 %v1028_v25 }
0x1100   :  { %1009 = vmatprep.subr.bf16.mxu1 %v1169_v0  ;;  %v793_v0 = vrot.slane %v1216_v5, 3 }
0x1103   :  { %1010 = vmatpush3.bf16.msra.mxu1 %v1029_v26 }
0x11be   :  { %v656_v42 = vpop.f32.mrf.mxu1 }
0x11bf   :  { %v663_v43 = vrot.slane %v656_v42, 2 }
0x11c0   :  { %v997_v44 = vpop.f32.mrf.mxu1 }
0x11c1   :  { %v665_v45 = vadd.f32 %v663_v43, %v1238_v13 }
0x11c2   :  { %v659_v46 = vpop.f32.mrf.mxu1 }
0x11c3   :  { %v900_v47 = vmul.f32 -1.442695, %v665_v45 }
0x11c4   :  { %v998_v48 = vpop.f32.mrf.mxu1 }
0x11c5   :  { %1066 = vpow2.f32 %v900_v47 }
0x11d2   :  { %v1067_v49 = vpop.eup %1066 }
0x11d3   :  { %v669_v50 = vadd.f32 1.0, %v1067_v49 }
0x11d5   :  { %1068 = vrcp.f32 %v669_v50 }
0x11e2   :  { %v1069_v51 = vpop.eup %1068 }
0x11e3   :  { %v672_v52 = vmul.f32 2.0, %v1069_v51  ;;  %v677_v57 = vmul.f32 %v1069_v51, %v675_v56 }
0x11e5   :  { %v901_v53 = vadd.f32 -1.0, %v672_v52 }
0x11e7   :  { %679 = vrot.lane.b32.xlu1 %v901_v53, %s1165_s15 }
0x1259   :  { %v680_v54 = vpop.permute.xlu1 %679 }
0x125a   :  { %v682_v55 = vmul.f32 %v1069_v51, %v680_v54 }
0x125c   :  { %684 = vrot.lane.b32.xlu0 %v682_v55, %s1171_s0 }
0x12ce   :  { %v685_v58 = vpop.permute.xlu0 %684 }
0x12cf   :  { %v687_v59 = vadd.f32 %v685_v58, %v677_v57 }
0x12d1   :  { %1070 = vtanh.f32 %v687_v59  ;;  %v755_v21 = vrot.slane %v687_v59, 7 }
0x12de   :  { %v1071_v60 = vpop.eup %1070 }
0x12df   :  { %690 = vrot.lane.b32.xlu1 %v1071_v60, %s1165_s15 }
0x1351   :  { %v691_v61 = vpop.permute.xlu1 %690 }
0x1352   :  { %v693_v62 = vmul.f32 %v1069_v51, %v691_v61 }
0x1354   :  { %v694_v63 = vpack.c.bf16 %v693_v62, %v693_v62 }
0x1356   :  { %v696_v1 = vrot.slane %v694_v63, 3 }
0x1358   :  { %697 = vrot.lane.b32.xlu0 %v696_v1, %s1171_s0 }
0x13ca   :  { %v698_v3 = vpop.permute.xlu0 %697 }
0x13cb   :  { %1004 = vmatmul.mubr.msk.bf16.vlgmr.msra.gmra.mxu0 %vm135_vm2, %v698_v3 }
0x148b   :  { %v736_v6 = vpop.f32.mrf.mxu0 }
0x148c   :  { %v743_v7 = vrot.slane %v736_v6, 1 }
0x148d   :  { %v1005_v8 = vpop.f32.mrf.mxu0 }
0x148e   :  { %v745_v9 = vadd.f32 %v743_v7, %v1238_v13 }
0x148f   :  { %v739_v10 = vpop.f32.mrf.mxu0 }
0x1490   :  { %v903_v11 = vmul.f32 -1.442695, %v745_v9 }
0x1491   :  { %v1006_v12 = vpop.f32.mrf.mxu0 }
0x1492   :  { %1072 = vpow2.f32 %v903_v11 }
0x149f   :  { %v1073_v14 = vpop.eup %1072 }
0x14a0   :  { %v749_v15 = vadd.f32 1.0, %v1073_v14 }
0x14a2   :  { %1074 = vrcp.f32 %v749_v15 }
0x14af   :  { %v1075_v16 = vpop.eup %1074 }
0x14b0   :  { %v752_v17 = vmul.f32 2.0, %v1075_v16  ;;  %v757_v22 = vmul.f32 %v1075_v16, %v755_v21 }
0x14b2   :  { %v904_v18 = vadd.f32 -1.0, %v752_v17 }
0x14b4   :  { %759 = vrot.lane.b32.xlu1 %v904_v18, %s1165_s15 }
0x1526   :  { %v760_v19 = vpop.permute.xlu1 %759 }
0x1527   :  { %v762_v20 = vmul.f32 %v1075_v16, %v760_v19 }
0x1529   :  { %764 = vrot.lane.b32.xlu0 %v762_v20, %s1171_s0 }
0x159b   :  { %v765_v23 = vpop.permute.xlu0 %764 }
0x159c   :  { %v767_v13 = vadd.f32 %v765_v23, %v757_v22 }
0x159e   :  { %1076 = vtanh.f32 %v767_v13 }
0x15ab   :  { %v1077_v24 = vpop.eup %1076 }
0x15ac   :  { %770 = vrot.lane.b32.xlu1 %v1077_v24, %s1165_s15 }
0x161e   :  { %v771_v27 = vpop.permute.xlu1 %770 }
0x161f   :  { %v773_v2 = vmul.f32 %v1075_v16, %v771_v27 }
0x1621   :  { %v774_v28 = vpack.c.bf16 %v773_v2, %v773_v2  ;;  %841 = vrot.lane.b32.xlu1 %v773_v2, %s1171_s0 }
0x1623   :  { %v776_v29 = vshrl.u32 %v774_v28, 16 }
0x1625   :  { %v778_v30 = vrot.slane %v776_v29, 3 }
0x1627   :  { %779 = vrot.lane.b32.xlu0 %v778_v30, %s1171_s0 }
0x162b   :  { %846 = vrot.lane.b32.xlu0 %v767_v13, %s1172_s2 }
0x1693   :  { %v842_v4 = vpop.permute.xlu1 %841 }
0x1694   :  { %v844_v33 = vsel %vm135_vm2, %v842_v4, 0.0 }
0x1695   :  { %v851_v37 = vrot.slane %v844_v33, 6 }
0x1699   :  { %v780_v31 = vpop.permute.xlu0 %779 }
0x169a   :  { %1012 = vmatmul.mubr.msk.bf16.vlgmr.msra.gmra.mxu1 %vm135_vm2, %v780_v31 }
0x169d   :  { %v847_v32 = vpop.permute.xlu0 %846 }
0x169e   :  { %v849_v34 = vsel %vm135_vm2, %v847_v32, 0.0 }
0x169f   :  { %v854_v39 = vrot.slane %v849_v34, 5 }
0x175a   :  { %v832_v35 = vpop.f32.mrf.mxu1 }
0x175b   :  { %v833_v36 = vadd.f32 %v832_v35, %v793_v0 }
0x175c   :  { %v1013_v38 = vpop.f32.mrf.mxu1 }
0x175d   :  { %v839_v40 = vsel %vm838_vm3, %v833_v36, 0.0 }
0x175e   :  { %v857_v41 = vsel %vm856_vm4, %v839_v40, %v851_v37  ;;  %v835_v42 = vpop.f32.mrf.mxu1 }
0x175f   :  { %v859_v43 = vsel %vm858_vm5, %v857_v41, %v854_v39 }
0x1760   :  { %v1014_v5 = vpop.f32.mrf.mxu1  ;;  %860 = vst [vmem:[#allocation8] sm:$0x7] %v859_v43 }
0x1761   :  { %1149 = shalt.err (!%p1146_p5)
}
0x1762   :  { %870 = dma.vmem_to_hbm [thread:$0]  %s868_s29, 64, %s1332_s3, [#allocation4]  }
0x1763   :  { %1162 = dma.done.wait [#allocation4], 64  }
0x1764   :  { %1163 = vsyncadd [#allocation4], 4294967232 }
0x1765   :  { %874 = vsyncpa [#allocation3], 1 }
0x1766   :  { %875 = vsyncpa [#allocation6], 1 }
0x1767   :  { %876 = vsyncpa [#allocation4], 1 }

</bundles_post_ra>
